<compile_context>
chip_gen: v7x
topology: tpu7x:2x2x1
jax: 0.10.0
libtpu: 0.0.40
codegen_flags: <defaults>
</compile_context>

<pallas_src>
import functools

import jax
import jax.numpy as jnp
from jax import lax
from jax.experimental import pallas as pl
from jax.experimental.pallas import tpu as pltpu


def _coordconv3d_kernel(x_ref, w_ref, b_ref, o_ref, *, k, To, tM2, K):
    """One (batch, H*W-block) tile: k accumulating matmuls over the T taps.

    x_ref: (1, Tp, tM2, K)      bf16  H/W-unfolded, padded, coord-augmented
    w_ref: (k, K, Coutp)        bf16  per-T-tap flattened conv weights
    b_ref: (1, Coutp)           f32   bias (zero-padded to 128 lanes)
    o_ref: (1, To, tM2, Coutp)  f32   lane-dense output tile
    """
    M = To * tM2
    Coutp = o_ref.shape[-1]

    # T-tap 0: static slice on an outer dim (no relayout), collapse rows.
    lhs = x_ref[0, 0:To, :, :].reshape(M, K)
    acc = jnp.dot(lhs, w_ref[0], preferred_element_type=jnp.float32)
    for kt in range(1, k):                 # consecutive acc += dot (MRB-friendly on v7x)
        lhs = x_ref[0, kt:kt + To, :, :].reshape(M, K)
        acc = acc + jnp.dot(lhs, w_ref[kt], preferred_element_type=jnp.float32)

    # Single write of the output tile, bias folded in.
    o_ref[0] = (acc + b_ref[...]).reshape(To, tM2, Coutp)


def _add_coord_channels(x):
    """x: (N, C, T, H, W) -> (N, C+3, T, H, W); concat order (input, xs, ys, zs)."""
    N, C, T, H, W = x.shape
    zz, yy, xx = jnp.meshgrid(
        jnp.arange(T, dtype=x.dtype),
        jnp.arange(H, dtype=x.dtype),
        jnp.arange(W, dtype=x.dtype),
        indexing="ij",
    )

    def rep(a):
        return jnp.broadcast_to(a[None, None], (N, 1, T, H, W)).astype(x.dtype)

    return jnp.concatenate([x, rep(xx), rep(yy), rep(zz)], axis=1)


def _pick_m2_block(M2):
    """Largest Ho*Wo block that still gives >=2 grid steps along that axis.

    Multiples of 16 keep the in-kernel (To, tM2) -> rows collapse a pure view
    for bf16; >=2 blocks restores pipelining / megacore balance on v7x.
    """
    for cand in (256, 128, 64, 32, 16):
        if M2 % cand == 0 and M2 // cand >= 2:
            return cand
    return M2


@functools.partial(jax.jit, static_argnames=("kernel_size", "padding"))
def coordconv3d_forward(x, weight, bias, *, kernel_size, padding):
    """x: (N, Cin, T, H, W); weight: (Cout, Cin+3, k, k, k); bias: (Cout,).

    Returns (N, Cout, To, Ho, Wo), matching PyTorch Conv3d on the
    coord-augmented input (stride=1, dilation=1, groups=1, zeros padding).
    """
    N, Cin, T, H, W = x.shape
    k, p = kernel_size, padding
    Cout = weight.shape[0]
    Cin3 = Cin + 3
    To, Ho, Wo = T + 2 * p - k + 1, H + 2 * p - k + 1, W + 2 * p - k + 1
    Tp = T + 2 * p
    M2 = Ho * Wo
    K = k * k * Cin3                              # contraction depth per T-tap
    Coutp = ((Cout + 127) // 128) * 128           # lane-dense output columns
    tM2 = _pick_m2_block(M2)

    # ---- XLA glue (fused under jit): coords + channels-last + bf16 + pad +
    #      H/W unfold into the contraction dim.  O(k^2 * input) bytes.
    xc = _add_coord_channels(x)                                   # (N,Cin3,T,H,W) f32
    x_cl = jnp.transpose(xc, (0, 2, 3, 4, 1)).astype(jnp.bfloat16)
    x_pad = jnp.pad(x_cl, ((0, 0), (p, p), (p, p), (p, p), (0, 0)))
    patches = [x_pad[:, :, kh:kh + Ho, kw:kw + Wo, :]
               for kh in range(k) for kw in range(k)]
    x_unf = jnp.concatenate(patches, axis=-1)                     # (N,Tp,Ho,Wo,K)
    x_unf = x_unf.reshape(N, Tp, M2, K)

    # per-T-tap weights: w_taps[kt, (kh*k+kw)*Cin3 + c, o] = weight[o, c, kt, kh, kw]
    w_taps = jnp.transpose(weight, (2, 3, 4, 1, 0)).reshape(k, K, Cout)
    w_taps = jnp.pad(w_taps, ((0, 0), (0, 0), (0, Coutp - Cout))).astype(jnp.bfloat16)
    b_pad = jnp.pad(bias, (0, Coutp - Cout)).reshape(1, Coutp).astype(jnp.float32)

    kernel = functools.partial(_coordconv3d_kernel, k=k, To=To, tM2=tM2, K=K)

    out = pl.pallas_call(
        kernel,
        out_shape=jax.ShapeDtypeStruct((N, To, M2, Coutp), jnp.float32),
        grid=(N, M2 // tM2),
        in_specs=[
            pl.BlockSpec((1, Tp, tM2, K), lambda n, j: (n, 0, j, 0)),
            pl.BlockSpec((k, K, Coutp), lambda n, j: (0, 0, 0)),
            pl.BlockSpec((1, Coutp), lambda n, j: (0, 0)),
        ],
        out_specs=pl.BlockSpec((1, To, tM2, Coutp), lambda n, j: (n, 0, j, 0)),
        compiler_params=pltpu.CompilerParams(
            dimension_semantics=("parallel", "parallel")),
    )(x_unf, w_taps, b_pad)

    out = out[..., :Cout].reshape(N, To, Ho, Wo, Cout)
    return jnp.transpose(out, (0, 4, 1, 2, 3))                    # NCTHW


if __name__ == "__main__":
    # small shapes consistent with the module
    N, Cin, T, H, W = 2, 4, 8, 8, 8
    Cout, k, pad = 8, 3, 1

    key = jax.random.PRNGKey(0)
    kx, kw, kb = jax.random.split(key, 3)

    x = jax.random.normal(kx, (N, Cin, T, H, W), dtype=jnp.float32)

    # deterministic Conv3d-style init (kaiming-uniform-ish bound)
    Cin3 = Cin + 3
    fan_in = Cin3 * k * k * k
    bound = 1.0 / float(jnp.sqrt(jnp.float32(fan_in)))
    weight = jax.random.uniform(kw, (Cout, Cin3, k, k, k),
                                minval=-bound, maxval=bound, dtype=jnp.float32)
    bias = jax.random.uniform(kb, (Cout,), minval=-bound, maxval=bound,
                              dtype=jnp.float32)

    out = coordconv3d_forward(x, weight, bias, kernel_size=k, padding=pad)
    out = jax.block_until_ready(out)

    # reference: XLA conv on the coord-augmented input, with the same bf16
    # rounding of input/weights (and f32 accumulation) as the kernel path.
    xc_ref = _add_coord_channels(x).astype(jnp.bfloat16).astype(jnp.float32)
    w_ref = weight.astype(jnp.bfloat16).astype(jnp.float32)
    ref = lax.conv_general_dilated(
        xc_ref, w_ref, window_strides=(1, 1, 1),
        padding=[(pad, pad)] * 3,
        dimension_numbers=("NCDHW", "OIDHW", "NCDHW"),
        precision=lax.Precision.HIGHEST,
    ) + bias.reshape(1, Cout, 1, 1, 1)

    assert out.shape == (N, Cout, T + 2 * pad - k + 1,
                         H + 2 * pad - k + 1, W + 2 * pad - k + 1)
    assert jnp.allclose(out, ref, atol=1e-3, rtol=1e-3), "mismatch vs reference"
    print("KERNEL_OK")
</pallas_src>

<mosaic_0001>
module attributes {stable_mosaic.version = 11 : i64} {
  func.func @_coordconv3d_kernel(%arg0: i32, %arg1: i32, %arg2: memref<1x10x32x63xbf16, #tpu.memory_space<vmem>>, %arg3: memref<3x63x128xbf16, #tpu.memory_space<vmem>>, %arg4: memref<1x128xf32, #tpu.memory_space<vmem>>, %arg5: memref<1x8x32x128xf32, #tpu.memory_space<vmem>>) attributes {dimension_semantics = [#tpu.dimension_semantics<parallel>, #tpu.dimension_semantics<parallel>], iteration_bounds = array<i64: 2, 2>, scalar_prefetch = 0 : i64, scratch_operands = 0 : i64, tpu.core_type = #tpu.core_type<tc>, window_params = [{transform_indices = @transform_0, window_bounds = array<i64: 1, 10, 32, 63>}, {pipeline_mode = #tpu.pipeline_mode<synchronous>, transform_indices = @transform_1, window_bounds = array<i64: 3, 63, 128>}, {pipeline_mode = #tpu.pipeline_mode<synchronous>, transform_indices = @transform_2, window_bounds = array<i64: 1, 128>}, {transform_indices = @transform_3, window_bounds = array<i64: 1, 8, 32, 128>}]} {
    %c0 = arith.constant 0 : index
    %c0_0 = arith.constant 0 : index
    %c0_1 = arith.constant 0 : index
    %c0_2 = arith.constant 0 : index
    %0 = vector.load %arg2[%c0, %c0_0, %c0_1, %c0_2] : memref<1x10x32x63xbf16, #tpu.memory_space<vmem>>, vector<1x8x32x63xbf16>
    %1 = vector.shape_cast %0 : vector<1x8x32x63xbf16> to vector<8x32x63xbf16>
    %2 = vector.shape_cast %1 : vector<8x32x63xbf16> to vector<256x63xbf16>
    %c0_3 = arith.constant 0 : index
    %c0_4 = arith.constant 0 : index
    %c0_5 = arith.constant 0 : index
    %3 = vector.load %arg3[%c0_3, %c0_4, %c0_5] : memref<3x63x128xbf16, #tpu.memory_space<vmem>>, vector<1x63x128xbf16>
    %4 = vector.shape_cast %3 : vector<1x63x128xbf16> to vector<63x128xbf16>
    %cst = arith.constant dense<0.000000e+00> : vector<256x128xf32>
    %5 = tpu.matmul %2, %4, %cst {dimension_numbers = #tpu.dot_dimension_numbers<[1], [0], [0], [1], [0, 0, 1, 1], [], []>} : vector<256x63xbf16>, vector<63x128xbf16>, vector<256x128xf32> -> vector<256x128xf32>
    %c0_6 = arith.constant 0 : index
    %c1 = arith.constant 1 : index
    %c0_7 = arith.constant 0 : index
    %c0_8 = arith.constant 0 : index
    %6 = vector.load %arg2[%c0_6, %c1, %c0_7, %c0_8] : memref<1x10x32x63xbf16, #tpu.memory_space<vmem>>, vector<1x8x32x63xbf16>
    %7 = vector.shape_cast %6 : vector<1x8x32x63xbf16> to vector<8x32x63xbf16>
    %8 = vector.shape_cast %7 : vector<8x32x63xbf16> to vector<256x63xbf16>
    %c1_9 = arith.constant 1 : index
    %c0_10 = arith.constant 0 : index
    %c0_11 = arith.constant 0 : index
    %9 = vector.load %arg3[%c1_9, %c0_10, %c0_11] : memref<3x63x128xbf16, #tpu.memory_space<vmem>>, vector<1x63x128xbf16>
    %10 = vector.shape_cast %9 : vector<1x63x128xbf16> to vector<63x128xbf16>
    %cst_12 = arith.constant dense<0.000000e+00> : vector<256x128xf32>
    %11 = tpu.matmul %8, %10, %cst_12 {dimension_numbers = #tpu.dot_dimension_numbers<[1], [0], [0], [1], [0, 0, 1, 1], [], []>} : vector<256x63xbf16>, vector<63x128xbf16>, vector<256x128xf32> -> vector<256x128xf32>
    %12 = arith.addf %5, %11 : vector<256x128xf32>
    %c0_13 = arith.constant 0 : index
    %c2 = arith.constant 2 : index
    %c0_14 = arith.constant 0 : index
    %c0_15 = arith.constant 0 : index
    %13 = vector.load %arg2[%c0_13, %c2, %c0_14, %c0_15] : memref<1x10x32x63xbf16, #tpu.memory_space<vmem>>, vector<1x8x32x63xbf16>
    %14 = vector.shape_cast %13 : vector<1x8x32x63xbf16> to vector<8x32x63xbf16>
    %15 = vector.shape_cast %14 : vector<8x32x63xbf16> to vector<256x63xbf16>
    %c2_16 = arith.constant 2 : index
    %c0_17 = arith.constant 0 : index
    %c0_18 = arith.constant 0 : index
    %16 = vector.load %arg3[%c2_16, %c0_17, %c0_18] : memref<3x63x128xbf16, #tpu.memory_space<vmem>>, vector<1x63x128xbf16>
    %17 = vector.shape_cast %16 : vector<1x63x128xbf16> to vector<63x128xbf16>
    %cst_19 = arith.constant dense<0.000000e+00> : vector<256x128xf32>
    %18 = tpu.matmul %15, %17, %cst_19 {dimension_numbers = #tpu.dot_dimension_numbers<[1], [0], [0], [1], [0, 0, 1, 1], [], []>} : vector<256x63xbf16>, vector<63x128xbf16>, vector<256x128xf32> -> vector<256x128xf32>
    %19 = arith.addf %12, %18 : vector<256x128xf32>
    %c0_20 = arith.constant 0 : index
    %c0_21 = arith.constant 0 : index
    %20 = vector.load %arg4[%c0_20, %c0_21] : memref<1x128xf32, #tpu.memory_space<vmem>>, vector<1x128xf32>
    %21 = vector.broadcast %20 : vector<1x128xf32> to vector<256x128xf32>
    %22 = arith.addf %19, %21 : vector<256x128xf32>
    %23 = vector.shape_cast %22 : vector<256x128xf32> to vector<8x32x128xf32>
    %c0_22 = arith.constant 0 : index
    %c0_23 = arith.constant 0 : index
    %c0_24 = arith.constant 0 : index
    %c0_25 = arith.constant 0 : index
    %24 = vector.load %arg5[%c0_22, %c0_23, %c0_24, %c0_25] : memref<1x8x32x128xf32, #tpu.memory_space<vmem>>, vector<1x8x32x128xf32>
    %25 = vector.shape_cast %24 : vector<1x8x32x128xf32> to vector<8x32x128xf32>
    %26 = vector.shape_cast %23 : vector<8x32x128xf32> to vector<1x8x32x128xf32>
    tpu.vector_store %arg5[%c0_22, %c0_23, %c0_24, %c0_25], %26 {strides = array<i32>} : memref<1x8x32x128xf32, #tpu.memory_space<vmem>>, vector<1x8x32x128xf32>,
    return
  }
  func.func @transform_0(%arg0: i32, %arg1: i32) -> (i32, i32, i32, i32) {
    %c0_i32 = arith.constant 0 : i32
    %c0_i32_0 = arith.constant 0 : i32
    %c0_i32_1 = arith.constant 0 : i32
    return %arg0, %c0_i32, %arg1, %c0_i32_0 : i32, i32, i32, i32
  }
  func.func @transform_1(%arg0: i32, %arg1: i32) -> (i32, i32, i32) {
    %c0_i32 = arith.constant 0 : i32
    %c0_i32_0 = arith.constant 0 : i32
    %c0_i32_1 = arith.constant 0 : i32
    %c0_i32_2 = arith.constant 0 : i32
    return %c0_i32, %c0_i32_0, %c0_i32_1 : i32, i32, i32
  }
  func.func @transform_2(%arg0: i32, %arg1: i32) -> (i32, i32) {
    %c0_i32 = arith.constant 0 : i32
    %c0_i32_0 = arith.constant 0 : i32
    %c0_i32_1 = arith.constant 0 : i32
    return %c0_i32, %c0_i32_0 : i32, i32
  }
  func.func @transform_3(%arg0: i32, %arg1: i32) -> (i32, i32, i32, i32) {
    %c0_i32 = arith.constant 0 : i32
    %c0_i32_0 = arith.constant 0 : i32
    %c0_i32_1 = arith.constant 0 : i32
    return %arg0, %c0_i32, %arg1, %c0_i32_0 : i32, i32, i32, i32
  }
}

</mosaic_0001>

<bundles_post_ra>
// kernel: coordconv3d_forward.1
= control target key start
LH: loop header
LB: loop body
LE: loop exit
PB: predicated region body
PF: predicated region fallthrough
CT: control target
= control target key end

     0   :  { %s2455_s12 = smov 0   ;;  %s2457_s13 = smov 0   ;;  %s2870_s0 = inlined_call_operand.vmem [shape: bf16[2,10,64,63], index: 0, kind: input, shape index: {}]   ;;  %s2871_s1 = inlined_call_operand.vmem [shape: bf16[3,63,128], index: 1, kind: input, shape index: {}]   ;;  %s2872_s2 = inlined_call_operand.vmem [shape: f32[1,128], index: 2, kind: input, shape index: {}]   ;;  %s2873_s3 = inlined_call_operand.vmem [shape: f32[2,8,64,128], index: 3, kind: output, shape index: {}]  }
   0x1   :  { %s2459_s14 = smov 0   ;;  %s2461_s15 = smov 0  }
   0x2   :  { %s2463_s16 = smov 0   ;;  %s2465_s17 = smov 0  }
   0x3   :  { %s2467_s18 = smov 0  }
   0x4 LB: > { %s22_s19 = sadd.s32 1, %s2424_s16  ;;  %s25_s20 = sadd.s32 1, %s2428_s17  ;;  %s2432_s18 = sphi %s2467_s18, %s13_s18   ;;  %s2428_s17 = sphi %s2465_s17, %s2880_s17   ;;  %s2424_s16 = sphi %s2463_s16, %s2879_s16   ;;  %s2420_s15 = sphi %s2461_s15, %s2878_s15   ;;  %s2416_s14 = sphi %s2459_s14, %s2877_s14   ;;  %s2412_s13 = sphi %s2457_s13, %s2876_s13   ;;  %s2408_s12 = sphi %s2455_s12, %s2875_s12  }
   0x5   : > { %p23_p0 = scmp.ge.s32.totalorder %s22_s19, 2  ;;  %s1803_s21 = sadd.s32 4294967295, %s2432_s18  }
   0x6   : > { %p41_p1 = scmp.ne.s32.totalorder %s2412_s13, %s2408_s12  ;;  %p42_p2 = scmp.eq.s32.totalorder %s2432_s18, 0 }
   0x7   : > { %s2882_s19 = smov (%p23_p0, %s22_s19), 0  ;;  %s2884_s20 = smov (!%p23_p0, %s25_s20), %s2428_s17 }
   0x8   : > { %p27_p3 = scmp.ge.s32.totalorder %s2884_s20, 2  ;;  %p115_p4 = scmp.eq.s32.totalorder %s1803_s21, 3 }
   0x9   : > { %s30_s22 = ssub.s32 %s2424_s16, %s2882_s19  ;;  %p43_p5 = por %p42_p2, %p41_p1 }
   0xa   : > { %s2886_s20 = smov (%p27_p3, %s2884_s20), 0  ;;  %p2503_p6 = por %p115_p4, %p41_p1 }
   0xb   : > { %s29_s24 = ssub.s32 %s2428_s17, %s2886_s20  ;;  %s34_s26 = sadd.s32 1, %s2412_s13 }
   0xc   : > { %s31_s25 = sor.u32 %s30_s22, %s29_s24  ;;  %p1806_p8 = scmp.ge.s32.totalorder %s2432_s18, 4 }
   0xd   : > { %p32_p7 = scmp.eq.s32.totalorder %s31_s25, 0 }
   0xe   : > { %143 = sbr.rel (%p1806_p8) target bundleno = 39 (0x27), region = 24 }
   0xf   : > { %s2511_s27 = scalar_select %p32_p7, %s2412_s13, %s34_s26  }
  0x15   : > { %146 = sbr.rel (!%p43_p5) target bundleno = 39 (0x27), region = 28  ;;  %s148_s28 = sand.u32 (%p43_p5), 1, %s2412_s13  }
  0x16   : > { %s2258_s29 = smul.u32 (%p43_p5), 160, %s148_s28  ;;  %s1807_s30 = sshll.u32 (%p43_p5), %s2424_s16, 2 }
  0x17   : > { %s2259_s4 = smul.u32 (%p43_p5), 80, %s2428_s17 }
  0x18   : > { %s2525_s10 = scalar_lea.vmem (%p43_p5), [#allocation2], %s2258_s29 }
  0x19   : > { %s153_s5 = sadd.s32 (%p43_p5), %s2259_s4, %s1807_s30 }
  0x1a   : > { %s1808_s6 = sshll.u32 (%p43_p5), %s153_s5, 2 }
  0x1b   : > { %s2520_s9 = scalar_lea.vmem (%p43_p5), %s2870_s0, %s1808_s6 }
  0x1c   : > { %v171_v0 = vld [vmem:[%s2520_s9] sm:$0xff]   ;;  %v175_v1 = vld [vmem:[%s2520_s9 + $0x8] sm:$0xff]  }
  0x1d   : > { %v179_v2 = vld [vmem:[%s2520_s9 + $0x20] sm:$0xff]   ;;  %172 = vst [vmem:[%s2525_s10] sm:$0xff] %v171_v0   ;;  %176 = vst [vmem:[%s2525_s10 + $0x8] sm:$0xff] %v175_v1   ;;  %v183_v3 = vld [vmem:[%s2520_s9 + $0x28] sm:$0xff]  }
  0x1e   : > { %180 = vst [vmem:[%s2525_s10 + $0x10] sm:$0xff] %v179_v2   ;;  %v187_v4 = vld [vmem:[%s2520_s9 + $0x40] sm:$0xff]   ;;  %v191_v5 = vld [vmem:[%s2520_s9 + $0x48] sm:$0xff]   ;;  %184 = vst [vmem:[%s2525_s10 + $0x18] sm:$0xff] %v183_v3  }
  0x1f   : > { %188 = vst [vmem:[%s2525_s10 + $0x20] sm:$0xff] %v187_v4   ;;  %192 = vst [vmem:[%s2525_s10 + $0x28] sm:$0xff] %v191_v5   ;;  %v195_v6 = vld [vmem:[%s2520_s9 + $0x60] sm:$0xff]   ;;  %v199_v7 = vld [vmem:[%s2520_s9 + $0x68] sm:$0xff]  }
  0x20   : > { %v203_v8 = vld [vmem:[%s2520_s9 + $0x80] sm:$0xff]   ;;  %196 = vst [vmem:[%s2525_s10 + $0x30] sm:$0xff] %v195_v6   ;;  %200 = vst [vmem:[%s2525_s10 + $0x38] sm:$0xff] %v199_v7   ;;  %v207_v9 = vld [vmem:[%s2520_s9 + $0x88] sm:$0xff]  }
  0x21   : > { %204 = vst [vmem:[%s2525_s10 + $0x40] sm:$0xff] %v203_v8   ;;  %v211_v10 = vld [vmem:[%s2520_s9 + $0xa0] sm:$0xff]   ;;  %v215_v11 = vld [vmem:[%s2520_s9 + $0xa8] sm:$0xff]   ;;  %208 = vst [vmem:[%s2525_s10 + $0x48] sm:$0xff] %v207_v9  }
  0x22   : > { %212 = vst [vmem:[%s2525_s10 + $0x50] sm:$0xff] %v211_v10   ;;  %216 = vst [vmem:[%s2525_s10 + $0x58] sm:$0xff] %v215_v11   ;;  %v219_v12 = vld [vmem:[%s2520_s9 + $0xc0] sm:$0xff]   ;;  %v223_v13 = vld [vmem:[%s2520_s9 + $0xc8] sm:$0xff]  }
  0x23   : > { %v227_v14 = vld [vmem:[%s2520_s9 + $0xe0] sm:$0xff]   ;;  %220 = vst [vmem:[%s2525_s10 + $0x60] sm:$0xff] %v219_v12   ;;  %224 = vst [vmem:[%s2525_s10 + $0x68] sm:$0xff] %v223_v13   ;;  %v231_v15 = vld [vmem:[%s2520_s9 + $0xe8] sm:$0xff]  }
  0x24   : > { %228 = vst [vmem:[%s2525_s10 + $0x70] sm:$0xff] %v227_v14   ;;  %v235_v16 = vld [vmem:[%s2520_s9 + $0x100] sm:$0xff]   ;;  %v239_v17 = vld [vmem:[%s2520_s9 + $0x108] sm:$0xff]   ;;  %232 = vst [vmem:[%s2525_s10 + $0x78] sm:$0xff] %v231_v15  }
  0x25   : > { %236 = vst [vmem:[%s2525_s10 + $0x80] sm:$0xff] %v235_v16   ;;  %240 = vst [vmem:[%s2525_s10 + $0x88] sm:$0xff] %v239_v17   ;;  %v243_v18 = vld [vmem:[%s2520_s9 + $0x120] sm:$0xff]   ;;  %v247_v19 = vld [vmem:[%s2520_s9 + $0x128] sm:$0xff]  }
  0x26   : > { %244 = vst [vmem:[%s2525_s10 + $0x90] sm:$0xff] %v243_v18   ;;  %248 = vst [vmem:[%s2525_s10 + $0x98] sm:$0xff] %v247_v19  }
  0x27 PF: > { %p1809_p9 = scmp.ge.s32.totalorder %s2432_s18, 1  ;;  %p352_p10 = scmp.lt.s32.totalorder %s2432_s18, 5 }
  0x29   : > { %p353_p11 = pnand %p1809_p9, %p352_p10 }
  0x2a   : > { %v2318_v20 = vld [vmem:[%s2871_s1 + $0x20] sm:$0xff] (!%p353_p11)   ;;  %vm618_vm0 = vcmask (!%p353_p11), 1046528   ;;  %vm619_vm1 = vcmask (!%p353_p11), 1047552   ;;  %v2320_v22 = vld [vmem:[%s2871_s1 + $0x28] sm:$0xff] (!%p353_p11)   ;;  %v2434_v24 = vmov (!%p353_p11), 65535   ;;  %v2322_v26 = vld [vmem:[%s2871_s1 + $0x30] sm:$0xff] (!%p353_p11)  }
  0x2b   : > { %356 = sbr.rel (%p353_p11) target bundleno = 376 (0x178), region = 69  ;;  %v2319_v21 = vld [vmem:[%s2871_s1] sm:$0xff] (!%p353_p11)   ;;  %2066 = vmatprep.subr.bf16.mxu1 (!%p353_p11), %v2318_v20  ;;  %v2321_v23 = vld [vmem:[%s2871_s1 + $0x8] sm:$0xff] (!%p353_p11)   ;;  %v620_v25 = vsel (!%p353_p11), %vm618_vm0, 4294967295, %v2434_v24  ;;  %v2323_v28 = vld [vmem:[%s2871_s1 + $0x10] sm:$0xff] (!%p353_p11)   ;;  %s359_s7 = sand.u32 (!%p353_p11), 1, %s2408_s12  }
  0x2c   : > { %2106 = vmatprep.subr.bf16.mxu0 (!%p353_p11), %v2319_v21  ;;  %2067 = vmatpush3.bf16.msra.mxu1 (!%p353_p11), %v2318_v20  ;;  %v621_v27 = vsel (!%p353_p11), %vm619_vm1, %v620_v25, 0  ;;  %v2324_v29 = vld [vmem:[%s2871_s1 + $0x38] sm:$0xff] (!%p353_p11)   ;;  %s2260_s10 = smul.u32 (!%p353_p11), 160, %s359_s7  ;;  %vm569_vm2 = vcmask (!%p353_p11), 515072   ;;  %v2330_v35 = vld [vmem:[%s2871_s1 + $0x40] sm:$0xff] (!%p353_p11)   ;;  %v2335_v40 = vld [vmem:[%s2871_s1 + $0x48] sm:$0xff] (!%p353_p11)  }
  0x2d   : > { %2107 = vmatpush3.bf16.msra.mxu0 (!%p353_p11), %v2319_v21  ;;  %2068 = vmatprep.subr.bf16.mxu1 (!%p353_p11), %v2320_v22  ;;  %v2325_v30 = vld [vmem:[%s2871_s1 + $0x18] sm:$0xff] (!%p353_p11)   ;;  %v623_v31 = vand.u32 (!%p353_p11), %v2324_v29, %v621_v27  ;;  %v2340_v43 = vld [vmem:[%s2871_s1 + $0x50] sm:$0xff] (!%p353_p11)   ;;  %s1810_s6 = sshll.u32 (!%p353_p11), %s359_s7, 8 }
  0x2e   : > { %2108 = vmatprep.subr.bf16.mxu0 (!%p353_p11), %v2321_v23  ;;  %v938_v32 = vand.u32 (!%p353_p11), %v2325_v30, %v621_v27  ;;  %s2593_s22 = scalar_lea.vmem (!%p353_p11), [#allocation2], %s2260_s10  ;;  %v2345_v46 = vld [vmem:[%s2871_s1 + $0x58] sm:$0xff] (!%p353_p11)   ;;  %s2712_s10 = scalar_lea.vmem (!%p353_p11), [#allocation3], %s1810_s6 }
  0x2f   : > { %v2326_v33 = vld [vmem:[%s2593_s22 + $0x10] sm:$0xff] (!%p353_p11)   ;;  %v2327_v34 = vld [vmem:[%s2593_s22] sm:$0xff] (!%p353_p11)   ;;  %v2328_v36 = vld [vmem:[%s2593_s22 + $0x18] sm:$0xff] (!%p353_p11)   ;;  %v1295_v48 = vand.u32 (!%p353_p11), %v2345_v46, %v621_v27 }
  0x30   : > { %2069 = vmatpush3.bf16.msra.mxu1 (!%p353_p11), %v2320_v22  ;;  %2074 = vmatprep.mubr.msk.bf16.mxu1 (!%p353_p11), %vm569_vm2, %v2326_v33  ;;  %v2329_v37 = vld [vmem:[%s2593_s22 + $0x8] sm:$0xff] (!%p353_p11)   ;;  %v2331_v38 = vld [vmem:[%s2593_s22 + $0x20] sm:$0xff] (!%p353_p11)   ;;  %v2332_v39 = vld [vmem:[%s2593_s22 + $0x10] sm:$0xff] (!%p353_p11)  }
  0x31   : > { %2109 = vmatpush3.bf16.msra.mxu0 (!%p353_p11), %v2321_v23  ;;  %2070 = vmatprep.subr.bf16.mxu1 (!%p353_p11), %v2322_v26  ;;  %v2333_v41 = vld [vmem:[%s2593_s22 + $0x28] sm:$0xff] (!%p353_p11)   ;;  %v2334_v42 = vld [vmem:[%s2593_s22 + $0x18] sm:$0xff] (!%p353_p11)   ;;  %v2336_v44 = vld [vmem:[%s2593_s22 + $0x30] sm:$0xff] (!%p353_p11)  }
  0x32   : > { %2110 = vmatprep.subr.bf16.mxu0 %v2323_v28  ;;  %2114 = vmatprep.mubr.msk.bf16.mxu0 %vm569_vm2, %v2327_v34  ;;  %v2337_v45 = vld [vmem:[%s2593_s22 + $0x20] sm:$0xff]   ;;  %v2338_v47 = vld [vmem:[%s2593_s22 + $0x38] sm:$0xff]   ;;  %v2339_v49 = vld [vmem:[%s2593_s22 + $0x28] sm:$0xff]   ;;  %s2001_s12 = sshll.u32 (%p2503_p6), %s2416_s14, 2  ;;  %s2002_s7 = sshll.u32 (%p2503_p6), %s2420_s15, 6 }
  0x33   : > { %v2341_v50 = vld [vmem:[%s2593_s22 + $0x40] sm:$0xff]   ;;  %v2342_v51 = vld [vmem:[%s2593_s22 + $0x30] sm:$0xff]   ;;  %v2343_v52 = vld [vmem:[%s2593_s22 + $0x48] sm:$0xff]   ;;  %s1570_s23 = sadd.s32 (%p2503_p6), %s2002_s7, %s2001_s12 }
  0x34   : > { %2071 = vmatpush3.bf16.msra.mxu1 %v2322_v26  ;;  %v2344_v53 = vld [vmem:[%s2593_s22 + $0x38] sm:$0xff]   ;;  %v2346_v54 = vld [vmem:[%s2593_s22 + $0x50] sm:$0xff]   ;;  %v2347_v55 = vld [vmem:[%s2593_s22 + $0x20] sm:$0xff]   ;;  %s2003_s11 = sshll.u32 (%p2503_p6), %s1570_s23, 3 }
  0x35   : > { %2111 = vmatpush3.bf16.msra.mxu0 %v2323_v28  ;;  %2072 = vmatprep.subr.bf16.mxu1 %v623_v31  ;;  %v2348_v56 = vld [vmem:[%s2593_s22 + $0x58] sm:$0xff]   ;;  %v2349_v57 = vld [vmem:[%s2593_s22 + $0x28] sm:$0xff]   ;;  %v2350_v58 = vld [vmem:[%s2593_s22 + $0x60] sm:$0xff]   ;;  %s2792_s24 = scalar_lea.vmem (%p2503_p6), %s2873_s3, %s2003_s11 }
  0x36   : > { %2112 = vmatprep.subr.bf16.mxu0 %v938_v32  ;;  %v2351_v59 = vld [vmem:[%s2593_s22 + $0x30] sm:$0xff]   ;;  %v2352_v60 = vld [vmem:[%s2593_s22 + $0x68] sm:$0xff]   ;;  %v2353_v61 = vld [vmem:[%s2593_s22 + $0x38] sm:$0xff]  }
  0x37   : > { %v2354_v62 = vld [vmem:[%s2593_s22 + $0x70] sm:$0xff]   ;;  %v2355_v63 = vld [vmem:[%s2593_s22 + $0x40] sm:$0xff]   ;;  %v2356_v0 = vld [vmem:[%s2593_s22 + $0x78] sm:$0xff]  }
  0x38   : > { %2073 = vmatpush3.bf16.msra.mxu1 %v623_v31  ;;  %v2357_v1 = vld [vmem:[%s2593_s22 + $0x48] sm:$0xff]   ;;  %v2358_v2 = vld [vmem:[%s2593_s22 + $0x80] sm:$0xff]   ;;  %v2359_v3 = vld [vmem:[%s2593_s22 + $0x50] sm:$0xff]  }
  0x39   : > { %2113 = vmatpush3.bf16.msra.mxu0 %v938_v32  ;;  %2186 = vmatprep.subr.bf16.mxu1 %v2319_v21  ;;  %v2360_v4 = vld [vmem:[%s2593_s22 + $0x88] sm:$0xff]   ;;  %v2361_v5 = vld [vmem:[%s2593_s22 + $0x58] sm:$0xff]   ;;  %v2362_v6 = vld [vmem:[%s2593_s22 + $0x40] sm:$0xff]  }
  0x3a   : > { %2146 = vmatprep.subr.bf16.mxu0 %v2330_v35  ;;  %v2363_v7 = vld [vmem:[%s2593_s22 + $0x60] sm:$0xff]   ;;  %v2364_v8 = vld [vmem:[%s2593_s22 + $0x48] sm:$0xff]   ;;  %v2366_v10 = vld [vmem:[%s2593_s22 + $0x50] sm:$0xff]  }
  0x3b   : > { %2075 = vmatmul.mubr.msk.bf16.vlgmr.msra.gmra.mrb[0].mxu1 %vm569_vm2, %v2328_v36  ;;  %v2365_v9 = vld [vmem:[%s2593_s22 + $0x68] sm:$0xff]   ;;  %v2367_v11 = vld [vmem:[%s2593_s22 + $0x70] sm:$0xff]   ;;  %v2368_v12 = vld [vmem:[%s2593_s22 + $0x58] sm:$0xff]  }
  0x3c   : > { %2115 = vmatmul.mubr.msk.bf16.vlgmr.msra.gmra.mrb[0].mxu0 %vm569_vm2, %v2329_v37  ;;  %2190 = vmatpush3.bf16.msra.mxu1 %v2319_v21  ;;  %v2369_v13 = vld [vmem:[%s2593_s22 + $0x78] sm:$0xff]   ;;  %v2370_v14 = vld [vmem:[%s2593_s22 + $0x60] sm:$0xff]   ;;  %v2372_v16 = vld [vmem:[%s2593_s22 + $0x68] sm:$0xff]  }
  0x3d   : > { %2147 = vmatpush3.bf16.msra.mxu0 %v2330_v35  ;;  %2078 = vmatprep.mubr.msk.bf16.mxu1 %vm569_vm2, %v2331_v38  ;;  %v2371_v15 = vld [vmem:[%s2593_s22 + $0x80] sm:$0xff]   ;;  %v2373_v17 = vld [vmem:[%s2593_s22 + $0x88] sm:$0xff]   ;;  %v2374_v18 = vld [vmem:[%s2593_s22 + $0x70] sm:$0xff]  }
  0x3e   : > { %2118 = vmatprep.mubr.msk.bf16.mxu0 %vm569_vm2, %v2332_v39  ;;  %2148 = vmatprep.subr.bf16.mxu0 %v2335_v40  ;;  %v2375_v19 = vld [vmem:[%s2593_s22 + $0x90] sm:$0xff]   ;;  %v2376_v20 = vld [vmem:[%s2593_s22 + $0x78] sm:$0xff]   ;;  %v2708_v39 = vld [vmem:[%s2872_s2] ss:$0 sm:$0xff] }
  0x3f   : > { %2187 = vmatprep.subr.bf16.mxu1 %v2321_v23  ;;  %v2377_v21 = vld [vmem:[%s2593_s22 + $0x98] sm:$0xff]  }
  0x40   : > { %2191 = vmatpush3.bf16.msra.mxu1 %v2321_v23 }
  0x41   : > { %2149 = vmatpush3.bf16.msra.mxu0 %v2335_v40  ;;  %2188 = vmatprep.subr.bf16.mxu1 %v2323_v28 }
  0x42   : > { %2150 = vmatprep.subr.bf16.mxu0 %v2340_v43 }
  0x43   : > { %2079 = vmatmul.mubr.msk.bf16.gmra.mrb[4].mxu1 %vm569_vm2, %v2333_v41 }
  0x44   : > { %2119 = vmatmul.mubr.msk.bf16.gmra.mrb[4].mxu0 %vm569_vm2, %v2334_v42  ;;  %2082 = vmatprep.mubr.msk.bf16.mxu1 %vm569_vm2, %v2336_v44 }
  0x45   : > { %2122 = vmatprep.mubr.msk.bf16.mxu0 %vm569_vm2, %v2337_v45  ;;  %2151 = vmatpush3.bf16.msra.mxu0 %v2340_v43 }
  0x46   : > { %2192 = vmatpush3.bf16.msra.mxu1 %v2323_v28  ;;  %2152 = vmatprep.subr.bf16.mxu0 %v1295_v48 }
  0x47   : > { %2189 = vmatprep.subr.bf16.mxu1 %v938_v32 }
  0x49   : > { %2153 = vmatpush3.bf16.msra.mxu0 %v1295_v48 }
  0x4a   : > { %2193 = vmatpush3.bf16.msra.mxu1 %v938_v32 }
  0x4b   : > { %2083 = vmatmul.mubr.msk.bf16.gmra.mrb[8].mxu1 %vm569_vm2, %v2338_v47 }
  0x4c   : > { %2123 = vmatmul.mubr.msk.bf16.gmra.mrb[8].mxu0 %vm569_vm2, %v2339_v49  ;;  %2086 = vmatprep.mubr.msk.bf16.mxu1 %vm569_vm2, %v2341_v50 }
  0x4d   : > { %2126 = vmatprep.mubr.msk.bf16.mxu0 %vm569_vm2, %v2342_v51 }
  0x53   : > { %2087 = vmatmul.mubr.msk.bf16.gmra.mrb[12].mxu1 %vm569_vm2, %v2343_v52 }
  0x54   : > { %2127 = vmatmul.mubr.msk.bf16.gmra.mrb[12].mxu0 %vm569_vm2, %v2344_v53  ;;  %2090 = vmatprep.mubr.msk.bf16.mxu1 %vm569_vm2, %v2346_v54 }
  0x55   : > { %2154 = vmatprep.mubr.msk.bf16.mxu0 %vm569_vm2, %v2347_v55 }
  0x5b   : > { %2091 = vmatmul.mubr.msk.bf16.gmra.mrb[16].mxu1 %vm569_vm2, %v2348_v56 }
  0x5c   : > { %2155 = vmatmul.mubr.msk.bf16.vlgmr.msra.gmra.mrb[0].mxu0 %vm569_vm2, %v2349_v57  ;;  %2094 = vmatprep.mubr.msk.bf16.mxu1 %vm569_vm2, %v2350_v58 }
  0x5d   : > { %2158 = vmatprep.mubr.msk.bf16.mxu0 %vm569_vm2, %v2351_v59 }
  0x63   : > { %2095 = vmatmul.mubr.msk.bf16.gmra.mrb[20].mxu1 %vm569_vm2, %v2352_v60 }
  0x64   : > { %2159 = vmatmul.mubr.msk.bf16.gmra.mrb[4].mxu0 %vm569_vm2, %v2353_v61  ;;  %2098 = vmatprep.mubr.msk.bf16.mxu1 %vm569_vm2, %v2354_v62 }
  0x65   : > { %2162 = vmatprep.mubr.msk.bf16.mxu0 %vm569_vm2, %v2355_v63 }
  0x6b   : > { %2099 = vmatmul.mubr.msk.bf16.gmra.mrb[24].mxu1 %vm569_vm2, %v2356_v0 }
  0x6c   : > { %2163 = vmatmul.mubr.msk.bf16.gmra.mrb[8].mxu0 %vm569_vm2, %v2357_v1  ;;  %2102 = vmatprep.mubr.msk.bf16.mxu1 %vm569_vm2, %v2358_v2 }
  0x6d   : > { %2166 = vmatprep.mubr.msk.bf16.mxu0 %vm569_vm2, %v2359_v3 }
  0x73   : > { %2103 = vmatmul.mubr.msk.bf16.gmra.mrb[28].mxu1 %vm569_vm2, %v2360_v4 }
  0x74   : > { %2167 = vmatmul.mubr.msk.bf16.gmra.mrb[12].mxu0 %vm569_vm2, %v2361_v5  ;;  %2130 = vmatprep.mubr.msk.bf16.mxu1 %vm569_vm2, %v2362_v6 }
  0x75   : > { %2170 = vmatprep.mubr.msk.bf16.mxu0 %vm569_vm2, %v2363_v7 }
  0x7b   : > { %2131 = vmatmul.mubr.msk.bf16.vlgmr.msra.gmra.mrb[16].mxu1 %vm569_vm2, %v2364_v8 }
  0x7c   : > { %2171 = vmatmul.mubr.msk.bf16.gmra.mrb[16].mxu0 %vm569_vm2, %v2365_v9  ;;  %2134 = vmatprep.mubr.msk.bf16.mxu1 %vm569_vm2, %v2366_v10 }
  0x7d   : > { %2174 = vmatprep.mubr.msk.bf16.mxu0 %vm569_vm2, %v2367_v11 }
  0x83   : > { %2135 = vmatmul.mubr.msk.bf16.gmra.mrb[20].mxu1 %vm569_vm2, %v2368_v12 }
  0x84   : > { %2175 = vmatmul.mubr.msk.bf16.gmra.mrb[20].mxu0 %vm569_vm2, %v2369_v13  ;;  %2138 = vmatprep.mubr.msk.bf16.mxu1 %vm569_vm2, %v2370_v14 }
  0x85   : > { %2178 = vmatprep.mubr.msk.bf16.mxu0 %vm569_vm2, %v2371_v15 }
  0x8b   : > { %2139 = vmatmul.mubr.msk.bf16.gmra.mrb[24].mxu1 %vm569_vm2, %v2372_v16 }
  0x8c   : > { %2179 = vmatmul.mubr.msk.bf16.gmra.mrb[24].mxu0 %vm569_vm2, %v2373_v17  ;;  %2142 = vmatprep.mubr.msk.bf16.mxu1 %vm569_vm2, %v2374_v18 }
  0x8d   : > { %2182 = vmatprep.mubr.msk.bf16.mxu0 %vm569_vm2, %v2375_v19 }
  0x93   : > { %2143 = vmatmul.mubr.msk.bf16.gmra.mrb[28].mxu1 %vm569_vm2, %v2376_v20 }
  0x94   : > { %2183 = vmatmul.mubr.msk.bf16.gmra.mrb[28].mxu0 %vm569_vm2, %v2377_v21 }
 0x10e   : > { %v2076_v22 = vpop.f32.mrb[0].mxu1 }
 0x10f   : > { %v659_v23 = vpop.f32.mrb[1].mxu1 }
 0x110   : > { %v2077_v24 = vpop.f32.mrb[2].mxu1 }
 0x111   : > { %v662_v25 = vpop.f32.mrb[3].mxu1 }
 0x116   : > { %v2080_v26 = vpop.f32.mrb[4].mxu1 }
 0x117   : > { %v675_v27 = vpop.f32.mrb[5].mxu1 }
 0x118   : > { %v2081_v28 = vpop.f32.mrb[6].mxu1 }
 0x119   : > { %v678_v29 = vpop.f32.mrb[7].mxu1 }
 0x11e   : > { %v2084_v30 = vpop.f32.mrb[8].mxu1 }
 0x11f   : > { %v691_v31 = vpop.f32.mrb[9].mxu1 }
 0x120   : > { %v2085_v32 = vpop.f32.mrb[10].mxu1 }
 0x121   : > { %v694_v33 = vpop.f32.mrb[11].mxu1 }
 0x126   : > { %v2088_v34 = vpop.f32.mrb[12].mxu1 }
 0x127   : > { %v707_v35 = vpop.f32.mrb[13].mxu1 }
 0x128   : > { %v2089_v36 = vpop.f32.mrb[14].mxu1 }
 0x129   : > { %v710_v37 = vpop.f32.mrb[15].mxu1 }
 0x12f   : > { %v2156_v38 = vpop.f32.mrb[0].mxu0 }
 0x130   : > { %v2194_v40 = vadd.f32 %v2156_v38, %v2076_v22  ;;  %v1331_v41 = vpop.f32.mrb[1].mxu0 }
 0x131   : > { %v2195_v42 = vadd.f32 %v1331_v41, %v659_v23  ;;  %v2157_v43 = vpop.f32.mrb[2].mxu0 }
 0x132   : > { %v1499_v44 = vadd.f32 %v2194_v40, %v2708_v39  ;;  %v2196_v45 = vadd.f32 %v2157_v43, %v2077_v24  ;;  %v1334_v46 = vpop.f32.mrb[3].mxu0 }
 0x133   : > { %v1497_v47 = vadd.f32 %v2195_v42, %v2708_v39  ;;  %v2197_v48 = vadd.f32 %v1334_v46, %v662_v25 }
 0x134   : > { %1531 = vst [vmem:[%s2712_s10 + $0x10] sm:$0xff] %v1499_v44  ;;  %v1500_v49 = vadd.f32 %v2196_v45, %v2708_v39 }
 0x135   : > { %1529 = vst [vmem:[%s2712_s10] sm:$0xff] %v1497_v47  ;;  %v1498_v50 = vadd.f32 %v2197_v48, %v2708_v39 }
 0x136   : > { %1532 = vst [vmem:[%s2712_s10 + $0x18] sm:$0xff] %v1500_v49 }
 0x137   : > { %1530 = vst [vmem:[%s2712_s10 + $0x8] sm:$0xff] %v1498_v50  ;;  %v2160_v51 = vpop.f32.mrb[4].mxu0 }
 0x138   : > { %v2198_v52 = vadd.f32 %v2160_v51, %v2080_v26  ;;  %v1347_v53 = vpop.f32.mrb[5].mxu0 }
 0x139   : > { %v2199_v54 = vadd.f32 %v1347_v53, %v675_v27  ;;  %v2161_v55 = vpop.f32.mrb[6].mxu0 }
 0x13a   : > { %v1503_v56 = vadd.f32 %v2198_v52, %v2708_v39  ;;  %v2200_v57 = vadd.f32 %v2161_v55, %v2081_v28  ;;  %v1350_v58 = vpop.f32.mrb[7].mxu0 }
 0x13b   : > { %v1501_v59 = vadd.f32 %v2199_v54, %v2708_v39  ;;  %v2201_v60 = vadd.f32 %v1350_v58, %v678_v29 }
 0x13c   : > { %1535 = vst [vmem:[%s2712_s10 + $0x30] sm:$0xff] %v1503_v56  ;;  %v1504_v61 = vadd.f32 %v2200_v57, %v2708_v39 }
 0x13d   : > { %1533 = vst [vmem:[%s2712_s10 + $0x20] sm:$0xff] %v1501_v59  ;;  %v1502_v62 = vadd.f32 %v2201_v60, %v2708_v39 }
 0x13e   : > { %1536 = vst [vmem:[%s2712_s10 + $0x38] sm:$0xff] %v1504_v61 }
 0x13f   : > { %1534 = vst [vmem:[%s2712_s10 + $0x28] sm:$0xff] %v1502_v62  ;;  %v2164_v63 = vpop.f32.mrb[8].mxu0 }
 0x140   : > { %v2202_v0 = vadd.f32 %v2164_v63, %v2084_v30  ;;  %v1363_v1 = vpop.f32.mrb[9].mxu0 }
 0x141   : > { %v2203_v2 = vadd.f32 %v1363_v1, %v691_v31  ;;  %v2165_v3 = vpop.f32.mrb[10].mxu0 }
 0x142   : > { %v1507_v4 = vadd.f32 %v2202_v0, %v2708_v39  ;;  %v2204_v5 = vadd.f32 %v2165_v3, %v2085_v32  ;;  %v1366_v6 = vpop.f32.mrb[11].mxu0 }
 0x143   : > { %v1505_v7 = vadd.f32 %v2203_v2, %v2708_v39  ;;  %v2205_v8 = vadd.f32 %v1366_v6, %v694_v33 }
 0x144   : > { %1539 = vst [vmem:[%s2712_s10 + $0x50] sm:$0xff] %v1507_v4  ;;  %v1508_v9 = vadd.f32 %v2204_v5, %v2708_v39 }
 0x145   : > { %1537 = vst [vmem:[%s2712_s10 + $0x40] sm:$0xff] %v1505_v7  ;;  %v1506_v10 = vadd.f32 %v2205_v8, %v2708_v39 }
 0x146   : > { %1540 = vst [vmem:[%s2712_s10 + $0x58] sm:$0xff] %v1508_v9 }
 0x147   : > { %1538 = vst [vmem:[%s2712_s10 + $0x48] sm:$0xff] %v1506_v10  ;;  %v2168_v11 = vpop.f32.mrb[12].mxu0 }
 0x148   : > { %v2206_v12 = vadd.f32 %v2168_v11, %v2088_v34  ;;  %v1379_v13 = vpop.f32.mrb[13].mxu0 }
 0x149   : > { %v2207_v14 = vadd.f32 %v1379_v13, %v707_v35  ;;  %v2169_v15 = vpop.f32.mrb[14].mxu0 }
 0x14a   : > { %v1511_v16 = vadd.f32 %v2206_v12, %v2708_v39  ;;  %v2208_v17 = vadd.f32 %v2169_v15, %v2089_v36  ;;  %v1382_v18 = vpop.f32.mrb[15].mxu0 }
 0x14b   : > { %v1509_v19 = vadd.f32 %v2207_v14, %v2708_v39  ;;  %v2209_v20 = vadd.f32 %v1382_v18, %v710_v37 }
 0x14c   : > { %1543 = vst [vmem:[%s2712_s10 + $0x70] sm:$0xff] %v1511_v16  ;;  %v1512_v21 = vadd.f32 %v2208_v17, %v2708_v39 }
 0x14d   : > { %1541 = vst [vmem:[%s2712_s10 + $0x60] sm:$0xff] %v1509_v19  ;;  %v1510_v22 = vadd.f32 %v2209_v20, %v2708_v39 }
 0x14e   : > { %1544 = vst [vmem:[%s2712_s10 + $0x78] sm:$0xff] %v1512_v21  ;;  %v2132_v23 = vpop.f32.mrb[16].mxu1 }
 0x14f   : > { %1542 = vst [vmem:[%s2712_s10 + $0x68] sm:$0xff] %v1510_v22  ;;  %v2172_v24 = vpop.f32.mrb[16].mxu0  ;;  %v1038_v25 = vpop.f32.mrb[17].mxu1 }
 0x150   : > { %v2210_v26 = vadd.f32 %v2172_v24, %v2132_v23  ;;  %v1395_v27 = vpop.f32.mrb[17].mxu0  ;;  %v2133_v28 = vpop.f32.mrb[18].mxu1  ;;  %v1664_v24 = vld [vmem:[%s2712_s10 + $0x8] sm:$0xff] (%p2503_p6) }
 0x151   : > { %v2211_v29 = vadd.f32 %v1395_v27, %v1038_v25  ;;  %v2173_v30 = vpop.f32.mrb[18].mxu0  ;;  %v1041_v31 = vpop.f32.mrb[19].mxu1  ;;  %v1666_v25 = vld [vmem:[%s2712_s10 + $0x10] sm:$0xff] (%p2503_p6)  ;;  %v1670_v27 = vld [vmem:[%s2712_s10 + $0x20] sm:$0xff] (%p2503_p6)  ;;  %1665 = vst [vmem:[%s2792_s24 + $0x8] sm:$0xff] (%p2503_p6), %v1664_v24 }
 0x152   : > { %v1515_v32 = vadd.f32 %v2210_v26, %v2708_v39  ;;  %v2212_v33 = vadd.f32 %v2173_v30, %v2133_v28  ;;  %v1398_v34 = vpop.f32.mrb[19].mxu0  ;;  %v1668_v26 = vld [vmem:[%s2712_s10 + $0x18] sm:$0xff] (%p2503_p6)  ;;  %v1672_v28 = vld [vmem:[%s2712_s10 + $0x28] sm:$0xff] (%p2503_p6)  ;;  %1667 = vst [vmem:[%s2792_s24 + $0x10] sm:$0xff] (%p2503_p6), %v1666_v25  ;;  %1671 = vst [vmem:[%s2792_s24 + $0x40] sm:$0xff] (%p2503_p6), %v1670_v27 }
 0x153   : > { %v1513_v35 = vadd.f32 %v2211_v29, %v2708_v39  ;;  %v2213_v36 = vadd.f32 %v1398_v34, %v1041_v31  ;;  %v1674_v29 = vld [vmem:[%s2712_s10 + $0x30] sm:$0xff] (%p2503_p6)  ;;  %v1676_v30 = vld [vmem:[%s2712_s10 + $0x38] sm:$0xff] (%p2503_p6)  ;;  %v1678_v31 = vld [vmem:[%s2712_s10 + $0x40] sm:$0xff] (%p2503_p6)  ;;  %1669 = vst [vmem:[%s2792_s24 + $0x18] sm:$0xff] (%p2503_p6), %v1668_v26 }
 0x154   : > { %1547 = vst [vmem:[%s2712_s10 + $0x90] sm:$0xff] %v1515_v32  ;;  %v1516_v37 = vadd.f32 %v2212_v33, %v2708_v39  ;;  %v1680_v32 = vld [vmem:[%s2712_s10 + $0x48] sm:$0xff] (%p2503_p6)  ;;  %v1682_v33 = vld [vmem:[%s2712_s10 + $0x50] sm:$0xff] (%p2503_p6)  ;;  %v1684_v34 = vld [vmem:[%s2712_s10 + $0x58] sm:$0xff] (%p2503_p6) }
 0x155   : > { %1545 = vst [vmem:[%s2712_s10 + $0x80] sm:$0xff] %v1513_v35  ;;  %v1514_v38 = vadd.f32 %v2213_v36, %v2708_v39  ;;  %1673 = vst [vmem:[%s2792_s24 + $0x48] sm:$0xff] (%p2503_p6), %v1672_v28  ;;  %v1686_v35 = vld [vmem:[%s2712_s10 + $0x60] sm:$0xff] (%p2503_p6) }
 0x156   : > { %1548 = vst [vmem:[%s2712_s10 + $0x98] sm:$0xff] %v1516_v37  ;;  %v2136_v40 = vpop.f32.mrb[20].mxu1  ;;  %1675 = vst [vmem:[%s2792_s24 + $0x50] sm:$0xff] (%p2503_p6), %v1674_v29  ;;  %v1688_v36 = vld [vmem:[%s2712_s10 + $0x68] sm:$0xff] (%p2503_p6)  ;;  %v1690_v37 = vld [vmem:[%s2712_s10 + $0x70] sm:$0xff] (%p2503_p6) }
 0x157   : > { %1546 = vst [vmem:[%s2712_s10 + $0x88] sm:$0xff] %v1514_v38  ;;  %v2176_v41 = vpop.f32.mrb[20].mxu0  ;;  %v1054_v42 = vpop.f32.mrb[21].mxu1  ;;  %1677 = vst [vmem:[%s2792_s24 + $0x58] sm:$0xff] (%p2503_p6), %v1676_v30  ;;  %v1692_v38 = vld [vmem:[%s2712_s10 + $0x78] sm:$0xff] (%p2503_p6) }
 0x158   : > { %v2214_v43 = vadd.f32 %v2176_v41, %v2136_v40  ;;  %v1411_v44 = vpop.f32.mrb[21].mxu0  ;;  %v2137_v45 = vpop.f32.mrb[22].mxu1  ;;  %1679 = vst [vmem:[%s2792_s24 + $0x80] sm:$0xff] (%p2503_p6), %v1678_v31  ;;  %1681 = vst [vmem:[%s2792_s24 + $0x88] sm:$0xff] (%p2503_p6), %v1680_v32 }
 0x159   : > { %v2215_v46 = vadd.f32 %v1411_v44, %v1054_v42  ;;  %v2177_v47 = vpop.f32.mrb[22].mxu0  ;;  %v1057_v48 = vpop.f32.mrb[23].mxu1  ;;  %1683 = vst [vmem:[%s2792_s24 + $0x90] sm:$0xff] (%p2503_p6), %v1682_v33  ;;  %1685 = vst [vmem:[%s2792_s24 + $0x98] sm:$0xff] (%p2503_p6), %v1684_v34 }
 0x15a   : > { %v1519_v49 = vadd.f32 %v2214_v43, %v2708_v39  ;;  %v2216_v50 = vadd.f32 %v2177_v47, %v2137_v45  ;;  %v1414_v51 = vpop.f32.mrb[23].mxu0  ;;  %1687 = vst [vmem:[%s2792_s24 + $0xc0] sm:$0xff] (%p2503_p6), %v1686_v35  ;;  %1689 = vst [vmem:[%s2792_s24 + $0xc8] sm:$0xff] (%p2503_p6), %v1688_v36 }
 0x15b   : > { %v1517_v52 = vadd.f32 %v2215_v46, %v2708_v39  ;;  %v2217_v53 = vadd.f32 %v1414_v51, %v1057_v48  ;;  %1691 = vst [vmem:[%s2792_s24 + $0xd0] sm:$0xff] (%p2503_p6), %v1690_v37  ;;  %1693 = vst [vmem:[%s2792_s24 + $0xd8] sm:$0xff] (%p2503_p6), %v1692_v38  ;;  %v1698_v42 = vld [vmem:[%s2712_s10 + $0x90] sm:$0xff] (%p2503_p6) }
 0x15c   : > { %1551 = vst [vmem:[%s2712_s10 + $0xb0] sm:$0xff] %v1519_v49  ;;  %v1520_v54 = vadd.f32 %v2216_v50, %v2708_v39  ;;  %v1694_v40 = vld [vmem:[%s2712_s10 + $0x80] sm:$0xff] (%p2503_p6)  ;;  %1699 = vst [vmem:[%s2792_s24 + $0x110] sm:$0xff] (%p2503_p6), %v1698_v42 }
 0x15d   : > { %1549 = vst [vmem:[%s2712_s10 + $0xa0] sm:$0xff] %v1517_v52  ;;  %v1518_v55 = vadd.f32 %v2217_v53, %v2708_v39  ;;  %1695 = vst [vmem:[%s2792_s24 + $0x100] sm:$0xff] (%p2503_p6), %v1694_v40  ;;  %v1700_v43 = vld [vmem:[%s2712_s10 + $0x98] sm:$0xff] (%p2503_p6) }
 0x15e   : > { %1552 = vst [vmem:[%s2712_s10 + $0xb8] sm:$0xff] %v1520_v54  ;;  %v2140_v56 = vpop.f32.mrb[24].mxu1  ;;  %v1696_v41 = vld [vmem:[%s2712_s10 + $0x88] sm:$0xff] (%p2503_p6)  ;;  %1701 = vst [vmem:[%s2792_s24 + $0x118] sm:$0xff] (%p2503_p6), %v1700_v43 }
 0x15f   : > { %1550 = vst [vmem:[%s2712_s10 + $0xa8] sm:$0xff] %v1518_v55  ;;  %v2180_v57 = vpop.f32.mrb[24].mxu0  ;;  %v1070_v58 = vpop.f32.mrb[25].mxu1  ;;  %1697 = vst [vmem:[%s2792_s24 + $0x108] sm:$0xff] (%p2503_p6), %v1696_v41 }
 0x160   : > { %v2218_v59 = vadd.f32 %v2180_v57, %v2140_v56  ;;  %v1427_v60 = vpop.f32.mrb[25].mxu0  ;;  %v2141_v61 = vpop.f32.mrb[26].mxu1 }
 0x161   : > { %v2219_v62 = vadd.f32 %v1427_v60, %v1070_v58  ;;  %v2181_v63 = vpop.f32.mrb[26].mxu0  ;;  %v1073_v0 = vpop.f32.mrb[27].mxu1 }
 0x162   : > { %v1523_v1 = vadd.f32 %v2218_v59, %v2708_v39  ;;  %v2220_v2 = vadd.f32 %v2181_v63, %v2141_v61  ;;  %v1430_v3 = vpop.f32.mrb[27].mxu0 }
 0x163   : > { %v1521_v4 = vadd.f32 %v2219_v62, %v2708_v39  ;;  %v2221_v5 = vadd.f32 %v1430_v3, %v1073_v0  ;;  %v1706_v46 = vld [vmem:[%s2712_s10 + $0xb0] sm:$0xff] (%p2503_p6) }
 0x164   : > { %1555 = vst [vmem:[%s2712_s10 + $0xd0] sm:$0xff] %v1523_v1  ;;  %v1524_v6 = vadd.f32 %v2220_v2, %v2708_v39  ;;  %v1702_v44 = vld [vmem:[%s2712_s10 + $0xa0] sm:$0xff] (%p2503_p6)  ;;  %1707 = vst [vmem:[%s2792_s24 + $0x150] sm:$0xff] (%p2503_p6), %v1706_v46 }
 0x165   : > { %1553 = vst [vmem:[%s2712_s10 + $0xc0] sm:$0xff] %v1521_v4  ;;  %v1522_v7 = vadd.f32 %v2221_v5, %v2708_v39  ;;  %1703 = vst [vmem:[%s2792_s24 + $0x140] sm:$0xff] (%p2503_p6), %v1702_v44  ;;  %v1708_v47 = vld [vmem:[%s2712_s10 + $0xb8] sm:$0xff] (%p2503_p6) }
 0x166   : > { %1556 = vst [vmem:[%s2712_s10 + $0xd8] sm:$0xff] %v1524_v6  ;;  %v2144_v8 = vpop.f32.mrb[28].mxu1  ;;  %v1704_v45 = vld [vmem:[%s2712_s10 + $0xa8] sm:$0xff] (%p2503_p6)  ;;  %1709 = vst [vmem:[%s2792_s24 + $0x158] sm:$0xff] (%p2503_p6), %v1708_v47 }
 0x167   : > { %1554 = vst [vmem:[%s2712_s10 + $0xc8] sm:$0xff] %v1522_v7  ;;  %v2184_v9 = vpop.f32.mrb[28].mxu0  ;;  %v1086_v10 = vpop.f32.mrb[29].mxu1  ;;  %1705 = vst [vmem:[%s2792_s24 + $0x148] sm:$0xff] (%p2503_p6), %v1704_v45 }
 0x168   : > { %v2222_v11 = vadd.f32 %v2184_v9, %v2144_v8  ;;  %v1443_v12 = vpop.f32.mrb[29].mxu0  ;;  %v2145_v13 = vpop.f32.mrb[30].mxu1 }
 0x169   : > { %v2223_v14 = vadd.f32 %v1443_v12, %v1086_v10  ;;  %v2185_v15 = vpop.f32.mrb[30].mxu0  ;;  %v1089_v16 = vpop.f32.mrb[31].mxu1  ;;  %1567 = sbr.rel (!%p2503_p6) target bundleno = 376 (0x178), region = 77 }
 0x16a   : > { %v1527_v17 = vadd.f32 %v2222_v11, %v2708_v39  ;;  %v2224_v18 = vadd.f32 %v2185_v15, %v2145_v13  ;;  %v1446_v19 = vpop.f32.mrb[31].mxu0 }
 0x16b   : > { %v1525_v20 = vadd.f32 %v2223_v14, %v2708_v39  ;;  %v2225_v21 = vadd.f32 %v1446_v19, %v1089_v16  ;;  %v1714_v50 = vld [vmem:[%s2712_s10 + $0xd0] sm:$0xff] (%p2503_p6) }
 0x16c   : > { %1559 = vst [vmem:[%s2712_s10 + $0xf0] sm:$0xff] %v1527_v17  ;;  %v1528_v22 = vadd.f32 %v2224_v18, %v2708_v39  ;;  %v1710_v48 = vld [vmem:[%s2712_s10 + $0xc0] sm:$0xff] (%p2503_p6)  ;;  %1715 = vst [vmem:[%s2792_s24 + $0x190] sm:$0xff] (%p2503_p6), %v1714_v50 }
 0x16d   : > { %1557 = vst [vmem:[%s2712_s10 + $0xe0] sm:$0xff] %v1525_v20  ;;  %v1526_v23 = vadd.f32 %v2225_v21, %v2708_v39  ;;  %v1662_v39 = vld [vmem:[%s2712_s10] sm:$0xff] (%p2503_p6)  ;;  %1711 = vst [vmem:[%s2792_s24 + $0x180] sm:$0xff] (%p2503_p6), %v1710_v48  ;;  %v1716_v51 = vld [vmem:[%s2712_s10 + $0xd8] sm:$0xff] (%p2503_p6) }
 0x16e   : > { %1560 = vst [vmem:[%s2712_s10 + $0xf8] sm:$0xff] %v1528_v22  ;;  %1663 = vst [vmem:[%s2792_s24] sm:$0xff] (%p2503_p6), %v1662_v39  ;;  %v1712_v49 = vld [vmem:[%s2712_s10 + $0xc8] sm:$0xff] (%p2503_p6) }
 0x16f   : > { %1558 = vst [vmem:[%s2712_s10 + $0xe8] sm:$0xff] %v1526_v23  ;;  %1713 = vst [vmem:[%s2792_s24 + $0x188] sm:$0xff] (%p2503_p6), %v1712_v49 }
 0x170   : > { %1717 = vst [vmem:[%s2792_s24 + $0x198] sm:$0xff] %v1716_v51 }
 0x173   : > { %v1722_v54 = vld [vmem:[%s2712_s10 + $0xf0] sm:$0xff] }
 0x174   : > { %v1718_v52 = vld [vmem:[%s2712_s10 + $0xe0] sm:$0xff]  ;;  %1723 = vst [vmem:[%s2792_s24 + $0x1d0] sm:$0xff] %v1722_v54 }
 0x175   : > { %1719 = vst [vmem:[%s2792_s24 + $0x1c0] sm:$0xff] %v1718_v52  ;;  %v1724_v55 = vld [vmem:[%s2712_s10 + $0xf8] sm:$0xff] }
 0x176   : > { %v1720_v53 = vld [vmem:[%s2712_s10 + $0xe8] sm:$0xff]  ;;  %1725 = vst [vmem:[%s2792_s24 + $0x1d8] sm:$0xff] %v1724_v55 }
 0x177   : > { %1721 = vst [vmem:[%s2792_s24 + $0x1c8] sm:$0xff] %v1720_v53 }
 0x178 PF: > { %s13_s18 = sadd.s32 1, %s2432_s18   ;;  %s2875_s12 = smov %s2412_s13 }
 0x179   : > { %p10_p12 = scmp.ge.s32.totalorder %s13_s18, 6   ;;  %s2876_s13 = smov %s2511_s27 }
 0x17a   : > { %s2877_s14 = smov %s2424_s16  ;;  %s2878_s15 = smov %s2428_s17 }
 0x17b   : > { %s2879_s16 = smov %s2882_s19  ;;  %s2880_s17 = smov %s2886_s20 }
 0x17c   :  { %12 = sbr.rel (!%p10_p12) target bundleno = 4 (0x4), region = 150 }

</bundles_post_ra>
